<compile_context>
chip_gen: v6e
topology: v6e:2x2x1
jax: 0.10.0
libtpu: 0.0.40
codegen_flags: <defaults>
</compile_context>

<pallas_src>
import functools

import jax
import jax.numpy as jnp
import numpy as np
from jax.experimental import pallas as pl
from jax.experimental.pallas import tpu as pltpu


def _round_up(x, m):
    return (x + m - 1) // m * m


# ---------------------------------------------------------------------------
# Kernel: one batch tile per grid step; weights stay VMEM-resident (index_map
# returns (0, 0) on every step).  Three matmuls total:
#   h  = relu(m  @ We1 + be1)
#   hd = relu(h  @ Wed + bed)          (Wed = We2 @ Wd1, bed = be2 @ Wd1 + bd1)
#   rot = hd @ Wd2 + bd2 ; vel = hd @ Wd3c + bd3c   (cumsum folded into Wd3c)
# ---------------------------------------------------------------------------
def _gen_forward_kernel(
    m_ref,               # (TILE_N, LD)  f32 input motion (flattened)
    we1_ref, be1_ref,    # (LD, HP) bf16, (1, HP) f32
    wed_ref, bed_ref,    # (HP, HP) bf16, (1, HP) f32   fused encoder-out/decoder-in
    wd2_ref, bd2_ref,    # (HP, LD) bf16, (1, LD) f32   rotation head
    wd3_ref, bd3_ref,    # (HP, LD) bf16, (1, LD) f32   velocity head (cumsum folded)
    rot_ref, vel_ref,    # (TILE_N, LD) f32 outputs
):
    m = m_ref[...].astype(jnp.bfloat16)
    h = jnp.dot(m, we1_ref[...], preferred_element_type=jnp.float32) + be1_ref[...]
    h = jnp.maximum(h, 0.0).astype(jnp.bfloat16)

    hd = jnp.dot(h, wed_ref[...], preferred_element_type=jnp.float32) + bed_ref[...]
    hd = jnp.maximum(hd, 0.0).astype(jnp.bfloat16)

    rot = jnp.dot(hd, wd2_ref[...], preferred_element_type=jnp.float32) + bd2_ref[...]
    vel = jnp.dot(hd, wd3_ref[...], preferred_element_type=jnp.float32) + bd3_ref[...]
    rot_ref[...] = rot.astype(rot_ref.dtype)
    vel_ref[...] = vel.astype(vel_ref.dtype)


# ---------------------------------------------------------------------------
# Parameters (logical, unpadded, f32) and kernel-ready packing (folded/padded).
# ---------------------------------------------------------------------------
def make_params(key, input_size, seq_len, z_dim, hidden):
    """Deterministic logical parameters (Glorot-ish scaling, f32)."""
    ld = input_size * seq_len
    ks = jax.random.split(key, 10)

    def w(k, shape):
        return (jax.random.normal(k, shape, jnp.float32) / jnp.sqrt(shape[0])).astype(jnp.float32)

    def b(k, n):
        return (0.1 * jax.random.normal(k, (n,), jnp.float32)).astype(jnp.float32)

    return dict(
        we1=w(ks[0], (ld, hidden)),    be1=b(ks[5], hidden),
        we2=w(ks[1], (hidden, z_dim)), be2=b(ks[6], z_dim),
        wd1=w(ks[2], (z_dim, hidden)), bd1=b(ks[7], hidden),
        wd2=w(ks[3], (hidden, ld)),    bd2=b(ks[8], ld),
        wd3=w(ks[4], (hidden, ld)),    bd3=b(ks[9], ld),
    )


def pack_params(params, *, seq_len, input_size, z_dim, hidden):
    """Fold we2@wd1 and the time-cumsum in f32, pad hidden to 128, cast to bf16."""
    del z_dim
    ld = seq_len * input_size
    hp = _round_up(hidden, 128)   # 64 -> 128 (MXU-native width; weights resident)

    def pad2(w, r, c):
        return jnp.pad(w, ((0, r - w.shape[0]), (0, c - w.shape[1])))

    def pad_bias(b, c):
        return jnp.pad(b, (0, c - b.shape[0])).reshape(1, c)

    # --- fold encoder output layer into decoder input layer (f32, no nonlin on z):
    #   z @ wd1 + bd1 == h @ (we2 @ wd1) + (be2 @ wd1 + bd1)
    w_ed = params["we2"] @ params["wd1"]                     # (hidden, hidden)
    b_ed = params["be2"] @ params["wd1"] + params["bd1"]     # (hidden,)

    # --- fold cumsum over time into the velocity head (f32):
    #   cumsum_t(h @ wd3 + bd3) == h @ (wd3 @ C) + (bd3 @ C),
    # with C[t*D+d, s*D+d'] = (t <= s) * (d == d').
    t = jnp.arange(seq_len)
    c_time = (t[:, None] <= t[None, :]).astype(jnp.float32)              # (L, L)
    c_full = jnp.kron(c_time, jnp.eye(input_size, dtype=jnp.float32))    # (ld, ld)
    wd3c = params["wd3"] @ c_full
    bd3c = params["bd3"] @ c_full

    kparams = dict(
        we1=pad2(params["we1"], ld, hp).astype(jnp.bfloat16),
        be1=pad_bias(params["be1"], hp),
        wed=pad2(w_ed, hp, hp).astype(jnp.bfloat16),
        bed=pad_bias(b_ed, hp),
        wd2=pad2(params["wd2"], hp, ld).astype(jnp.bfloat16),
        bd2=params["bd2"].reshape(1, ld),
        wd3=pad2(wd3c, hp, ld).astype(jnp.bfloat16),
        bd3=bd3c.reshape(1, ld),
    )
    dims = dict(ld=ld, hp=hp)
    return kparams, dims


# ---------------------------------------------------------------------------
# Wrapper mirroring Trainer.forward: returns (m_recon_flip, m_recon_vel_flip).
# ---------------------------------------------------------------------------
def trainer_forward(m, m_flip, kparams, dims, *, seq_len, input_size):
    del m_flip  # unused by the reference Trainer.forward
    N, L, D = m.shape
    assert L == seq_len and D == input_size
    ld, hp = dims["ld"], dims["hp"]

    m_flat = m.reshape(N, ld)  # free bitcast (row-major contiguous)

    # Batch tiling: big tiles amortize per-step overhead (mem-bound kernel);
    # cap at ceil(N/2) so large batches give >=2 parallel steps (v7x megacore).
    if N >= 8:
        tile_n = min(1024, _round_up(N, 8))
        if N > 16:
            tile_n = min(tile_n, _round_up((N + 1) // 2, 8))
    else:
        tile_n = N  # block dim == full array dim satisfies the (8,128) rule
    grid = (pl.cdiv(N, tile_n),)

    flops = 2 * N * (ld * hp + hp * hp + 2 * hp * ld)
    bytes_accessed = int(
        N * ld * 4                              # input read
        + 2 * N * ld * 4                        # rot + vel writes
        + sum(int(np.prod(v.shape)) * v.dtype.itemsize for v in kparams.values())
    )

    def wspec(shape):
        return pl.BlockSpec(shape, lambda i: (0, 0))  # weights resident across grid

    rot, vel = pl.pallas_call(
        _gen_forward_kernel,
        out_shape=(
            jax.ShapeDtypeStruct((N, ld), jnp.float32),
            jax.ShapeDtypeStruct((N, ld), jnp.float32),
        ),
        grid=grid,
        in_specs=[
            pl.BlockSpec((tile_n, ld), lambda i: (i, 0)),
            wspec((ld, hp)), wspec((1, hp)),
            wspec((hp, hp)), wspec((1, hp)),
            wspec((hp, ld)), wspec((1, ld)),
            wspec((hp, ld)), wspec((1, ld)),
        ],
        out_specs=(
            pl.BlockSpec((tile_n, ld), lambda i: (i, 0)),
            pl.BlockSpec((tile_n, ld), lambda i: (i, 0)),
        ),
        compiler_params=pltpu.CompilerParams(
            dimension_semantics=("parallel",),
        ),
        cost_estimate=pl.CostEstimate(
            flops=flops, transcendentals=0, bytes_accessed=bytes_accessed),
    )(
        m_flat,
        kparams["we1"], kparams["be1"],
        kparams["wed"], kparams["bed"],
        kparams["wd2"], kparams["bd2"],
        kparams["wd3"], kparams["bd3"],
    )

    # Free reshapes (contiguous bitcasts) — no extra HBM traffic.
    m_recon_flip = rot.reshape(N, L, D)
    m_recon_vel_flip = vel.reshape(N, L, D)
    return m_recon_flip, m_recon_vel_flip


# ---------------------------------------------------------------------------
# Pure-JAX f32 reference (same logical model, un-fused / un-padded).
# ---------------------------------------------------------------------------
def reference_forward(m, params):
    N, L, D = m.shape
    m_flat = m.reshape(N, L * D)
    h = jax.nn.relu(m_flat @ params["we1"] + params["be1"])
    z = h @ params["we2"] + params["be2"]
    hd = jax.nn.relu(z @ params["wd1"] + params["bd1"])
    rot = (hd @ params["wd2"] + params["bd2"]).reshape(N, L, D)
    vel = (hd @ params["wd3"] + params["bd3"]).reshape(N, L, D)
    return rot, jnp.cumsum(vel, axis=1)


if __name__ == "__main__":
    # small, module-consistent shapes
    batch = 2
    seq_len = 8
    n_joints = 8
    input_size = n_joints * 3   # 24 exp-map features per frame
    z_dim = 32
    hidden = 64

    key = jax.random.PRNGKey(0)
    k_params, k_m = jax.random.split(key, 2)

    params = make_params(k_params, input_size, seq_len, z_dim, hidden)
    kparams, dims = pack_params(params, seq_len=seq_len, input_size=input_size,
                                z_dim=z_dim, hidden=hidden)

    m = jax.random.normal(k_m, (batch, seq_len, input_size), jnp.float32)
    m_flip = jnp.flip(m, axis=1)  # analogous to motion_exp_flip (unused by forward)

    fwd = jax.jit(
        functools.partial(trainer_forward, kparams=kparams, dims=dims,
                          seq_len=seq_len, input_size=input_size)
    )
    m_recon_flip, m_recon_vel_flip = fwd(m, m_flip)
    jax.block_until_ready((m_recon_flip, m_recon_vel_flip))

    assert m_recon_flip.shape == (batch, seq_len, input_size)
    assert m_recon_vel_flip.shape == (batch, seq_len, input_size)

    # loose check vs. f32 reference (bf16 matmul operands, f32 accumulation,
    # folds computed in f32 before the single bf16 cast)
    ref_rot, ref_vel = reference_forward(m, params)
    err_rot = float(jnp.max(jnp.abs(m_recon_flip - ref_rot)))
    err_vel = float(jnp.max(jnp.abs(m_recon_vel_flip - ref_vel)))
    assert np.isfinite(err_rot) and np.isfinite(err_vel)
    assert err_rot < 0.2 and err_vel < 0.2, (err_rot, err_vel)

    print("KERNEL_OK")
</pallas_src>

<mosaic_0001>
module attributes {stable_mosaic.version = 11 : i64} {
  func.func @_gen_forward_kernel(%arg0: i32, %arg1: memref<2x192xf32, #tpu.memory_space<vmem>>, %arg2: memref<192x128xbf16, #tpu.memory_space<vmem>>, %arg3: memref<1x128xf32, #tpu.memory_space<vmem>>, %arg4: memref<128x128xbf16, #tpu.memory_space<vmem>>, %arg5: memref<1x128xf32, #tpu.memory_space<vmem>>, %arg6: memref<128x192xbf16, #tpu.memory_space<vmem>>, %arg7: memref<1x192xf32, #tpu.memory_space<vmem>>, %arg8: memref<128x192xbf16, #tpu.memory_space<vmem>>, %arg9: memref<1x192xf32, #tpu.memory_space<vmem>>, %arg10: memref<2x192xf32, #tpu.memory_space<vmem>>, %arg11: memref<2x192xf32, #tpu.memory_space<vmem>>) attributes {dimension_semantics = [#tpu.dimension_semantics<parallel>], iteration_bounds = array<i64: 1>, scalar_prefetch = 0 : i64, scratch_operands = 0 : i64, tpu.core_type = #tpu.core_type<tc>, window_params = [{transform_indices = @transform_0, window_bounds = array<i64: 2, 192>}, {pipeline_mode = #tpu.pipeline_mode<synchronous>, transform_indices = @transform_1, window_bounds = array<i64: 192, 128>}, {pipeline_mode = #tpu.pipeline_mode<synchronous>, transform_indices = @transform_2, window_bounds = array<i64: 1, 128>}, {pipeline_mode = #tpu.pipeline_mode<synchronous>, transform_indices = @transform_3, window_bounds = array<i64: 128, 128>}, {pipeline_mode = #tpu.pipeline_mode<synchronous>, transform_indices = @transform_4, window_bounds = array<i64: 1, 128>}, {pipeline_mode = #tpu.pipeline_mode<synchronous>, transform_indices = @transform_5, window_bounds = array<i64: 128, 192>}, {pipeline_mode = #tpu.pipeline_mode<synchronous>, transform_indices = @transform_6, window_bounds = array<i64: 1, 192>}, {pipeline_mode = #tpu.pipeline_mode<synchronous>, transform_indices = @transform_7, window_bounds = array<i64: 128, 192>}, {pipeline_mode = #tpu.pipeline_mode<synchronous>, transform_indices = @transform_8, window_bounds = array<i64: 1, 192>}, {transform_indices = @transform_9, window_bounds = array<i64: 2, 192>}, {transform_indices = @transform_10, window_bounds = array<i64: 2, 192>}]} {
    %c0 = arith.constant 0 : index
    %c0_0 = arith.constant 0 : index
    %0 = vector.load %arg1[%c0, %c0_0] : memref<2x192xf32, #tpu.memory_space<vmem>>, vector<2x192xf32>
    %1 = arith.truncf %0 : vector<2x192xf32> to vector<2x192xbf16>
    %c0_1 = arith.constant 0 : index
    %c0_2 = arith.constant 0 : index
    %2 = vector.load %arg2[%c0_1, %c0_2] : memref<192x128xbf16, #tpu.memory_space<vmem>>, vector<192x128xbf16>
    %cst = arith.constant dense<0.000000e+00> : vector<2x128xf32>
    %3 = tpu.matmul %1, %2, %cst {dimension_numbers = #tpu.dot_dimension_numbers<[1], [0], [0], [1], [0, 0, 1, 1], [], []>} : vector<2x192xbf16>, vector<192x128xbf16>, vector<2x128xf32> -> vector<2x128xf32>
    %c0_3 = arith.constant 0 : index
    %c0_4 = arith.constant 0 : index
    %4 = vector.load %arg3[%c0_3, %c0_4] : memref<1x128xf32, #tpu.memory_space<vmem>>, vector<1x128xf32>
    %5 = vector.broadcast %4 : vector<1x128xf32> to vector<2x128xf32>
    %6 = arith.addf %3, %5 : vector<2x128xf32>
    %cst_5 = arith.constant 0.000000e+00 : f32
    %7 = vector.broadcast %cst_5 : f32 to vector<2x128xf32>
    %8 = arith.maximumf %6, %7 : vector<2x128xf32>
    %9 = arith.truncf %8 : vector<2x128xf32> to vector<2x128xbf16>
    %c0_6 = arith.constant 0 : index
    %c0_7 = arith.constant 0 : index
    %10 = vector.load %arg4[%c0_6, %c0_7] : memref<128x128xbf16, #tpu.memory_space<vmem>>, vector<128x128xbf16>
    %cst_8 = arith.constant dense<0.000000e+00> : vector<2x128xf32>
    %11 = tpu.matmul %9, %10, %cst_8 {dimension_numbers = #tpu.dot_dimension_numbers<[1], [0], [0], [1], [0, 0, 1, 1], [], []>} : vector<2x128xbf16>, vector<128x128xbf16>, vector<2x128xf32> -> vector<2x128xf32>
    %c0_9 = arith.constant 0 : index
    %c0_10 = arith.constant 0 : index
    %12 = vector.load %arg5[%c0_9, %c0_10] : memref<1x128xf32, #tpu.memory_space<vmem>>, vector<1x128xf32>
    %13 = vector.broadcast %12 : vector<1x128xf32> to vector<2x128xf32>
    %14 = arith.addf %11, %13 : vector<2x128xf32>
    %cst_11 = arith.constant 0.000000e+00 : f32
    %15 = vector.broadcast %cst_11 : f32 to vector<2x128xf32>
    %16 = arith.maximumf %14, %15 : vector<2x128xf32>
    %17 = arith.truncf %16 : vector<2x128xf32> to vector<2x128xbf16>
    %c0_12 = arith.constant 0 : index
    %c0_13 = arith.constant 0 : index
    %18 = vector.load %arg6[%c0_12, %c0_13] : memref<128x192xbf16, #tpu.memory_space<vmem>>, vector<128x192xbf16>
    %cst_14 = arith.constant dense<0.000000e+00> : vector<2x192xf32>
    %19 = tpu.matmul %17, %18, %cst_14 {dimension_numbers = #tpu.dot_dimension_numbers<[1], [0], [0], [1], [0, 0, 1, 1], [], []>} : vector<2x128xbf16>, vector<128x192xbf16>, vector<2x192xf32> -> vector<2x192xf32>
    %c0_15 = arith.constant 0 : index
    %c0_16 = arith.constant 0 : index
    %20 = vector.load %arg7[%c0_15, %c0_16] : memref<1x192xf32, #tpu.memory_space<vmem>>, vector<1x192xf32>
    %21 = vector.broadcast %20 : vector<1x192xf32> to vector<2x192xf32>
    %22 = arith.addf %19, %21 : vector<2x192xf32>
    %c0_17 = arith.constant 0 : index
    %c0_18 = arith.constant 0 : index
    %23 = vector.load %arg8[%c0_17, %c0_18] : memref<128x192xbf16, #tpu.memory_space<vmem>>, vector<128x192xbf16>
    %cst_19 = arith.constant dense<0.000000e+00> : vector<2x192xf32>
    %24 = tpu.matmul %17, %23, %cst_19 {dimension_numbers = #tpu.dot_dimension_numbers<[1], [0], [0], [1], [0, 0, 1, 1], [], []>} : vector<2x128xbf16>, vector<128x192xbf16>, vector<2x192xf32> -> vector<2x192xf32>
    %c0_20 = arith.constant 0 : index
    %c0_21 = arith.constant 0 : index
    %25 = vector.load %arg9[%c0_20, %c0_21] : memref<1x192xf32, #tpu.memory_space<vmem>>, vector<1x192xf32>
    %26 = vector.broadcast %25 : vector<1x192xf32> to vector<2x192xf32>
    %27 = arith.addf %24, %26 : vector<2x192xf32>
    %c0_22 = arith.constant 0 : index
    %c0_23 = arith.constant 0 : index
    %28 = vector.load %arg10[%c0_22, %c0_23] : memref<2x192xf32, #tpu.memory_space<vmem>>, vector<2x192xf32>
    tpu.vector_store %arg10[%c0_22, %c0_23], %22 {strides = array<i32>} : memref<2x192xf32, #tpu.memory_space<vmem>>, vector<2x192xf32>,
    %c0_24 = arith.constant 0 : index
    %c0_25 = arith.constant 0 : index
    %29 = vector.load %arg11[%c0_24, %c0_25] : memref<2x192xf32, #tpu.memory_space<vmem>>, vector<2x192xf32>
    tpu.vector_store %arg11[%c0_24, %c0_25], %27 {strides = array<i32>} : memref<2x192xf32, #tpu.memory_space<vmem>>, vector<2x192xf32>,
    return
  }
  func.func @transform_0(%arg0: i32) -> (i32, i32) {
    %c0_i32 = arith.constant 0 : i32
    %c0_i32_0 = arith.constant 0 : i32
    return %arg0, %c0_i32 : i32, i32
  }
  func.func @transform_1(%arg0: i32) -> (i32, i32) {
    %c0_i32 = arith.constant 0 : i32
    %c0_i32_0 = arith.constant 0 : i32
    %c0_i32_1 = arith.constant 0 : i32
    return %c0_i32, %c0_i32_0 : i32, i32
  }
  func.func @transform_2(%arg0: i32) -> (i32, i32) {
    %c0_i32 = arith.constant 0 : i32
    %c0_i32_0 = arith.constant 0 : i32
    %c0_i32_1 = arith.constant 0 : i32
    return %c0_i32, %c0_i32_0 : i32, i32
  }
  func.func @transform_3(%arg0: i32) -> (i32, i32) {
    %c0_i32 = arith.constant 0 : i32
    %c0_i32_0 = arith.constant 0 : i32
    %c0_i32_1 = arith.constant 0 : i32
    return %c0_i32, %c0_i32_0 : i32, i32
  }
  func.func @transform_4(%arg0: i32) -> (i32, i32) {
    %c0_i32 = arith.constant 0 : i32
    %c0_i32_0 = arith.constant 0 : i32
    %c0_i32_1 = arith.constant 0 : i32
    return %c0_i32, %c0_i32_0 : i32, i32
  }
  func.func @transform_5(%arg0: i32) -> (i32, i32) {
    %c0_i32 = arith.constant 0 : i32
    %c0_i32_0 = arith.constant 0 : i32
    %c0_i32_1 = arith.constant 0 : i32
    return %c0_i32, %c0_i32_0 : i32, i32
  }
  func.func @transform_6(%arg0: i32) -> (i32, i32) {
    %c0_i32 = arith.constant 0 : i32
    %c0_i32_0 = arith.constant 0 : i32
    %c0_i32_1 = arith.constant 0 : i32
    return %c0_i32, %c0_i32_0 : i32, i32
  }
  func.func @transform_7(%arg0: i32) -> (i32, i32) {
    %c0_i32 = arith.constant 0 : i32
    %c0_i32_0 = arith.constant 0 : i32
    %c0_i32_1 = arith.constant 0 : i32
    return %c0_i32, %c0_i32_0 : i32, i32
  }
  func.func @transform_8(%arg0: i32) -> (i32, i32) {
    %c0_i32 = arith.constant 0 : i32
    %c0_i32_0 = arith.constant 0 : i32
    %c0_i32_1 = arith.constant 0 : i32
    return %c0_i32, %c0_i32_0 : i32, i32
  }
  func.func @transform_9(%arg0: i32) -> (i32, i32) {
    %c0_i32 = arith.constant 0 : i32
    %c0_i32_0 = arith.constant 0 : i32
    return %arg0, %c0_i32 : i32, i32
  }
  func.func @transform_10(%arg0: i32) -> (i32, i32) {
    %c0_i32 = arith.constant 0 : i32
    %c0_i32_0 = arith.constant 0 : i32
    return %arg0, %c0_i32 : i32, i32
  }
}

</mosaic_0001>

<bundles_post_ra>
// kernel: trainer_forward.1
= control target key start
LH: loop header
LB: loop body
LE: loop exit
PB: predicated region body
PF: predicated region fallthrough
CT: control target
= control target key end

     0   :  { %16 = vsyncpa [#allocation3], 0  ;;  %s1076_s0 = inlined_call_operand.vmem [shape: f32[2,192], index: 0, kind: input, shape index: {}]   ;;  %s1077_s1 = inlined_call_operand.hbm [shape: bf16[192,128], index: 1, kind: input, shape index: {}]   ;;  %s1078_s2 = inlined_call_operand.vmem [shape: f32[1,128], index: 2, kind: input, shape index: {}]   ;;  %s1079_s3 = inlined_call_operand.hbm [shape: bf16[128,128], index: 3, kind: input, shape index: {}]   ;;  %s1080_s4 = inlined_call_operand.vmem [shape: f32[1,128], index: 4, kind: input, shape index: {}]   ;;  %s1081_s5 = inlined_call_operand.hbm [shape: bf16[128,192], index: 5, kind: input, shape index: {}]   ;;  %s1082_s6 = inlined_call_operand.vmem [shape: f32[1,192], index: 6, kind: input, shape index: {}]   ;;  %s1083_s7 = inlined_call_operand.hbm [shape: bf16[128,192], index: 7, kind: input, shape index: {}]   ;;  %s1084_s8 = inlined_call_operand.vmem [shape: f32[1,192], index: 8, kind: input, shape index: {}]   ;;  %s1085_s9 = inlined_call_operand.vmem [shape: f32[2,192], index: 9, kind: output, shape index: {0}]   ;;  %s1086_s10 = inlined_call_operand.vmem [shape: f32[2,192], index: 10, kind: output, shape index: {1}]  }
   0x1   :  { %17 = vsyncpa [#allocation5], 0 }
   0x2   :  { %18 = vsyncpa [#allocation8], 0  ;;  %s953_s13 = smov [#allocation4]   ;;  %s954_s15 = smov [#allocation2]  }
   0x3   :  { %s40_s14 = sshll.u32 %s953_s13, 4  ;;  %s26_s16 = sshll.u32 %s954_s15, 4  ;;  %s41_s14 = int_to_ptr.vmem [resolvable:$true] %s40_s14  ;;  %s27_s16 = int_to_ptr.vmem [resolvable:$true] %s26_s16 }
   0x4   :  { %s875_s17 = scalar_lea.vmem %s41_s14, 1024  ;;  %p880_p1 = scmp.lt.s32.totalorder %s41_s14, %s41_s14 }
   0x5   :  { %p876_p0 = scmp.ne.s32.totalorder %s41_s14, %s875_s17  ;;  %p881_p2 = scmp.lt.s32.totalorder %s875_s17, %s875_s17 }
   0x7   :  { %p882_p3 = por %p881_p2, %p880_p1 }
   0x9   :  { %p883_p4 = pnand %p882_p3, %p876_p0 }
   0xb   :  { %886 = shalt.err (!%p883_p4)
}
   0xc   :  { %s955_s18 = smov 64   ;;  %s956_s19 = smov 4  }
   0xd   :  { %46 = dma.hbm_to_vmem [thread:$0]  %s1079_s3, 1024, %s41_s14, [#allocation5], %s955_s18, %s955_s18, %s956_s19  }
   0xe   :  { %s895_s22 = scalar_lea.vmem %s27_s16, 1536  ;;  %p900_p6 = scmp.lt.s32.totalorder %s27_s16, %s27_s16 }
   0xf   :  { %p896_p5 = scmp.ne.s32.totalorder %s27_s16, %s895_s22  ;;  %p901_p7 = scmp.lt.s32.totalorder %s895_s22, %s895_s22 }
  0x11   :  { %p902_p8 = por %p901_p7, %p900_p6 }
  0x13   :  { %p903_p9 = pnand %p902_p8, %p896_p5 }
  0x15   :  { %906 = shalt.err (!%p903_p9)
}
  0x16   :  { %32 = dma.hbm_to_vmem [thread:$0]  %s1077_s1, 1536, %s27_s16, [#allocation3], %s955_s18, %s955_s18, %s956_s19  }
  0x17   :  { %s957_s25 = smov [#allocation6]  }
  0x18   :  { %s54_s26 = sshll.u32 %s957_s25, 4  ;;  %s55_s26 = int_to_ptr.vmem [resolvable:$true] %s54_s26 }
  0x19   :  { %s915_s27 = scalar_lea.vmem %s55_s26, 2048  ;;  %p920_p11 = scmp.lt.s32.totalorder %s55_s26, %s55_s26 }
  0x1a   :  { %p916_p10 = scmp.ne.s32.totalorder %s55_s26, %s915_s27  ;;  %p921_p12 = scmp.lt.s32.totalorder %s915_s27, %s915_s27 }
  0x1c   :  { %p922_p13 = por %p921_p12, %p920_p11 }
  0x1e   :  { %p923_p0 = pnand %p922_p13, %p916_p10 }
  0x20   :  { %926 = shalt.err (!%p923_p0)
}
  0x21   :  { %s958_s3 = smov 128   ;;  %s959_s28 = smov 8  }
  0x22   :  { %60 = dma.hbm_to_vmem [thread:$0]  %s1081_s5, 2048, %s55_s26, [#allocation5], %s958_s3, %s958_s3, %s959_s28  }
  0x23   :  { %s960_s11 = smov [#allocation7]  }
  0x24   :  { %s68_s12 = sshll.u32 %s960_s11, 4  ;;  %s69_s12 = int_to_ptr.vmem [resolvable:$true] %s68_s12 }
  0x25   :  { %s935_s1 = scalar_lea.vmem %s69_s12, 2048  ;;  %p940_p2 = scmp.lt.s32.totalorder %s69_s12, %s69_s12 }
  0x26   :  { %p936_p1 = scmp.ne.s32.totalorder %s69_s12, %s935_s1  ;;  %p941_p3 = scmp.lt.s32.totalorder %s935_s1, %s935_s1 }
  0x28   :  { %p942_p4 = por %p941_p3, %p940_p2 }
  0x2a   :  { %p943_p5 = pnand %p942_p4, %p936_p1 }
  0x2c   :  { %946 = shalt.err (!%p943_p5)
}
  0x2d   :  { %74 = dma.hbm_to_vmem [thread:$0]  %s1083_s7, 2048, %s69_s12, [#allocation8], %s958_s3, %s958_s3, %s959_s28  }
  0x2e   :  { %947 = dma.done.wait [#allocation3], 1536  }
  0x2f   :  { %948 = vsyncadd [#allocation3], 4294965760 }
  0x30   :  { %949 = dma.done.wait [#allocation5], 3072  }
  0x31   :  { %950 = vsyncadd [#allocation5], 4294964224 }
  0x32   :  { %951 = dma.done.wait [#allocation8], 2048  }
  0x33   :  { %952 = vsyncadd [#allocation8], 4294965248  ;;  %v961_v0 = vmov 0   ;;  %v962_v1 = vmov 0.0   ;;  %v799_v2 = vld [vmem:[#allocation2 + $0x38] sm:$0xff]   ;;  %v800_v3 = vld [vmem:[#allocation2 + $0x30] sm:$0xff]  }
  0x34   :  { %211 = vmatprep.subr.bf16.mxu0 %v961_v0  ;;  %767 = vmatprep.subr.bf16.mxu1 %v962_v1  ;;  %v801_v4 = vld [vmem:[#allocation2 + $0x28] sm:$0xff]   ;;  %v802_v5 = vld [vmem:[#allocation2 + $0x20] sm:$0xff]   ;;  %v811_v8 = vld [vmem:[#allocation4 + $0x38] sm:$0xff]   ;;  %vm207_vm0 = vcmask 523264   ;;  %vm963_vm1 = vmmov 0   ;;  %vm675_vm2 = vcmask 1041408  }
  0x35   :  { %212 = vmatpush1.bf16.msra.mxu0 %v799_v2  ;;  %v702_v6 = vld.sshfl [vmem:[%s1076_s0] sm:$0x33 pattern:$0x76325410]  ;;  %v803_v9 = vld [vmem:[#allocation2 + $0x18] sm:$0xff]   ;;  %768 = vmatpush3.bf16.msra.mxu1 %v811_v8  ;;  %v812_v11 = vld [vmem:[#allocation4 + $0x30] sm:$0xff]  }
  0x36   :  { %213 = vmatprep.subr.bf16.mxu0 %v961_v0  ;;  %v99_v7 = vcombine.high %v702_v6, %v702_v6  ;;  %769 = vmatprep.subr.bf16.mxu1 %v962_v1  ;;  %v804_v12 = vld [vmem:[#allocation2 + $0x10] sm:$0xff]   ;;  %v813_v13 = vld [vmem:[#allocation4 + $0x28] sm:$0xff]   ;;  %v814_v15 = vld [vmem:[#allocation4 + $0x20] sm:$0xff]   ;;  %v102_v23 = vpack.c.bf16 %v702_v6, %v702_v6  ;;  %vm676_vm3 = vcmask 519170  }
  0x37   :  { %v805_v14 = vld [vmem:[#allocation2 + $0x8] sm:$0xff]   ;;  %v806_v16 = vld [vmem:[#allocation2] sm:$0xff]   ;;  %v815_v17 = vld [vmem:[#allocation4 + $0x18] sm:$0xff]   ;;  %783 = vmatprep.mubr.msk.bf16.mxu1 %vm963_vm1, %v962_v1 }
  0x38   :  { %v103_v10 = vpack.c.bf16 %v99_v7, %v99_v7  ;;  %v807_v18 = vld [vmem:[#allocation2 + $0x58] sm:$0xff]   ;;  %v816_v19 = vld [vmem:[#allocation4 + $0x10] sm:$0xff]   ;;  %v809_v21 = vld [vmem:[#allocation2 + $0x48] sm:$0xff]  }
  0x39   :  { %214 = vmatpush1.bf16.msra.mxu0 %v800_v3  ;;  %770 = vmatpush3.bf16.msra.mxu1 %v812_v11  ;;  %v808_v20 = vld [vmem:[#allocation2 + $0x50] sm:$0xff]   ;;  %v810_v22 = vld [vmem:[#allocation2 + $0x40] sm:$0xff]   ;;  %v817_v24 = vld [vmem:[#allocation4 + $0x8] sm:$0xff]  }
  0x3a   :  { %215 = vmatprep.subr.bf16.mxu0 %v961_v0  ;;  %716 = vmatprep.mubr.msk.bf16.mxu0 %vm207_vm0, %v103_v10  ;;  %v818_v25 = vld [vmem:[#allocation4] sm:$0xff]   ;;  %v821_v26 = vld [vmem:[#allocation6 + $0x74] ss:$8 sps:$4 sm:$0xff]   ;;  %v822_v27 = vld [vmem:[#allocation7 + $0x70] ss:$8 sps:$4 sm:$0xff]   ;;  %v384_v10 = vlaneseq }
  0x3b   :  { %771 = vmatprep.subr.bf16.mxu1 %v962_v1  ;;  %v824_v28 = vld [vmem:[#allocation7 + $0x74] ss:$8 sps:$4 sm:$0xff]   ;;  %v830_v29 = vld [vmem:[#allocation7 + $0x64] ss:$8 sps:$4 sm:$0xff]   ;;  %v828_v30 = vld [vmem:[#allocation7 + $0x60] ss:$8 sps:$4 sm:$0xff]  }
  0x3c   :  { %v836_v31 = vld [vmem:[#allocation7 + $0x54] ss:$8 sps:$4 sm:$0xff]   ;;  %v834_v32 = vld [vmem:[#allocation7 + $0x50] ss:$8 sps:$4 sm:$0xff]   ;;  %v842_v33 = vld [vmem:[#allocation7 + $0x44] ss:$8 sps:$4 sm:$0xff]  }
  0x3d   :  { %216 = vmatpush1.bf16.msra.mxu0 %v801_v4  ;;  %772 = vmatpush3.bf16.msra.mxu1 %v813_v13  ;;  %v840_v34 = vld [vmem:[#allocation7 + $0x40] ss:$8 sps:$4 sm:$0xff]   ;;  %v848_v35 = vld [vmem:[#allocation7 + $0x34] ss:$8 sps:$4 sm:$0xff]   ;;  %v846_v36 = vld [vmem:[#allocation7 + $0x30] ss:$8 sps:$4 sm:$0xff]  }
  0x3e   :  { %217 = vmatprep.subr.bf16.mxu0 %v961_v0  ;;  %773 = vmatprep.subr.bf16.mxu1 %v962_v1  ;;  %v854_v37 = vld [vmem:[#allocation7 + $0x24] ss:$8 sps:$4 sm:$0xff]   ;;  %v852_v38 = vld [vmem:[#allocation7 + $0x20] ss:$8 sps:$4 sm:$0xff]   ;;  %v860_v39 = vld [vmem:[#allocation7 + $0x14] ss:$8 sps:$4 sm:$0xff]  }
  0x3f   :  { %v858_v40 = vld [vmem:[#allocation7 + $0x10] ss:$8 sps:$4 sm:$0xff]   ;;  %v703_v41 = vld [vmem:[%s1078_s2] ss:$0 sm:$0xff]  ;;  %v827_v49 = vld [vmem:[#allocation6 + $0x64] ss:$8 sps:$4 sm:$0xff]  }
  0x40   :  { %v819_v47 = vld [vmem:[#allocation6 + $0x70] ss:$8 sps:$4 sm:$0xff]   ;;  %v825_v51 = vld [vmem:[#allocation6 + $0x60] ss:$8 sps:$4 sm:$0xff]   ;;  %v833_v52 = vld [vmem:[#allocation6 + $0x54] ss:$8 sps:$4 sm:$0xff]  }
  0x41   :  { %218 = vmatpush1.bf16.msra.mxu0 %v802_v5  ;;  %774 = vmatpush3.bf16.msra.mxu1 %v814_v15  ;;  %v831_v53 = vld [vmem:[#allocation6 + $0x50] ss:$8 sps:$4 sm:$0xff]   ;;  %v839_v54 = vld [vmem:[#allocation6 + $0x44] ss:$8 sps:$4 sm:$0xff]   ;;  %v837_v55 = vld [vmem:[#allocation6 + $0x40] ss:$8 sps:$4 sm:$0xff]  }
  0x42   :  { %219 = vmatprep.subr.bf16.mxu0 %v961_v0  ;;  %775 = vmatprep.subr.bf16.mxu1 %v962_v1  ;;  %v845_v56 = vld [vmem:[#allocation6 + $0x34] ss:$8 sps:$4 sm:$0xff]   ;;  %v843_v57 = vld [vmem:[#allocation6 + $0x30] ss:$8 sps:$4 sm:$0xff]   ;;  %v851_v58 = vld [vmem:[#allocation6 + $0x24] ss:$8 sps:$4 sm:$0xff]  }
  0x43   :  { %v849_v59 = vld [vmem:[#allocation6 + $0x20] ss:$8 sps:$4 sm:$0xff]   ;;  %v857_v60 = vld [vmem:[#allocation6 + $0x14] ss:$8 sps:$4 sm:$0xff]   ;;  %v855_v61 = vld [vmem:[#allocation6 + $0x10] ss:$8 sps:$4 sm:$0xff]  }
  0x44   :  { %v863_v62 = vld [vmem:[#allocation6 + $0x4] ss:$8 sps:$4 sm:$0xff]   ;;  %v717_v2 = vld [vmem:[%s1080_s4] ss:$0 sm:$0xff]  ;;  %v385_v11 = vshrl.u32 %v384_v10, 7  ;;  %vm677_vm4 = vmor %vm676_vm3, %vm675_vm2 }
  0x45   :  { %220 = vmatpush1.bf16.msra.mxu0 %v803_v9  ;;  %776 = vmatpush3.bf16.msra.mxu1 %v815_v17  ;;  %v866_v63 = vld [vmem:[#allocation7 + $0x4] ss:$8 sps:$4 sm:$0xff]   ;;  %v531_v17 = vld [vmem:[%s1084_s8] sm:$0x3] }
  0x46   :  { %221 = vmatprep.subr.bf16.mxu0 %v961_v0  ;;  %777 = vmatprep.subr.bf16.mxu1 %v962_v1  ;;  %v390_v15 = vsub.s32 1, %v385_v11 }
  0x49   :  { %222 = vmatpush1.bf16.msra.mxu0 %v804_v12  ;;  %778 = vmatpush3.bf16.msra.mxu1 %v816_v19  ;;  %v964_v12 = vmov 1983009808  }
  0x4a   :  { %223 = vmatprep.subr.bf16.mxu0 %v961_v0  ;;  %779 = vmatprep.subr.bf16.mxu1 %v962_v1  ;;  %v668_v13 = vunpack.c.l.s4 %v964_v12 }
  0x4d   :  { %224 = vmatpush1.bf16.msra.mxu0 %v805_v14  ;;  %780 = vmatpush3.bf16.msra.mxu1 %v817_v24  ;;  %v386_v14 = vsub.s32 0, %v385_v11 }
  0x4e   :  { %225 = vmatprep.subr.bf16.mxu0 %v961_v0  ;;  %781 = vmatprep.subr.bf16.mxu1 %v962_v1  ;;  %v864_v1 = vld [vmem:[#allocation7] ss:$8 sps:$4 sm:$0xff]  }
  0x51   :  { %226 = vmatpush1.bf16.msra.mxu0 %v806_v16  ;;  %782 = vmatpush3.bf16.msra.mxu1 %v818_v25  ;;  %v382_v16 = vld [vmem:[%s1082_s6] sm:$0x3] }
  0x52   :  { %235 = vmatprep.subr.bf16.mxu0 %v961_v0  ;;  %474 = vmatprep.subr.bf16.mxu1 %v821_v26  ;;  %v387_v19 = vrot.slane %v382_v16, %v386_v14 }
  0x55   :  { %236 = vmatpush2.bf16.msra.mxu0 %v807_v18  ;;  %v669_v18 = vunpack.c.0.s8 %v668_v13 }
  0x56   :  { %237 = vmatprep.subr.bf16.mxu0 %v961_v0 }
  0x57   :  { %v672_v26 = vsub.s32 %v669_v18, %v385_v11 }
  0x59   :  { %238 = vmatpush2.bf16.msra.mxu0 %v808_v20  ;;  %v536_v20 = vrot.slane %v531_v17, %v386_v14 }
  0x5a   :  { %239 = vmatprep.subr.bf16.mxu0 %v961_v0 }
  0x5d   :  { %240 = vmatpush2.bf16.msra.mxu0 %v809_v21  ;;  %v391_v21 = vrot.slane %v382_v16, %v390_v15 }
  0x5e   :  { %241 = vmatprep.subr.bf16.mxu0 %v961_v0 }
  0x61   :  { %242 = vmatpush2.bf16.msra.mxu0 %v810_v22  ;;  %v540_v22 = vrot.slane %v531_v17, %v390_v15 }
  0x62   :  { %623 = vmatprep.subr.bf16.mxu0 %v824_v28 }
  0x64   :  { %244 = vmatmul.mubr.bf16.vlgmr.msra.gmra.mxu0 %v102_v23 }
  0x65   :  { %655 = vmatprep.mubr.bf16.mxu0 %v961_v0  ;;  %624 = vmatpush1.bf16.msra.mxu0 %v822_v27 }
  0x66   :  { %625 = vmatprep.subr.bf16.mxu0 %v830_v29 }
  0x69   :  { %626 = vmatpush1.bf16.msra.mxu0 %v828_v30 }
  0x6a   :  { %627 = vmatprep.subr.bf16.mxu0 %v836_v31 }
  0x6d   :  { %628 = vmatpush1.bf16.msra.mxu0 %v834_v32 }
  0x6e   :  { %629 = vmatprep.subr.bf16.mxu0 %v842_v33 }
  0x71   :  { %630 = vmatpush1.bf16.msra.mxu0 %v840_v34 }
  0x72   :  { %631 = vmatprep.subr.bf16.mxu0 %v848_v35 }
  0x75   :  { %632 = vmatpush1.bf16.msra.mxu0 %v846_v36 }
  0x76   :  { %633 = vmatprep.subr.bf16.mxu0 %v854_v37 }
  0x79   :  { %634 = vmatpush1.bf16.msra.mxu0 %v852_v38 }
  0x7a   :  { %635 = vmatprep.subr.bf16.mxu0 %v860_v39 }
  0x7d   :  { %636 = vmatpush1.bf16.msra.mxu0 %v858_v40 }
  0x7e   :  { %637 = vmatprep.subr.bf16.mxu0 %v866_v63 }
  0x81   :  { %638 = vmatpush1.bf16.msra.mxu0 %v864_v1 }
 0x124   :  { %v245_v42 = vpop.f32.mrf.mxu0 }
 0x125   :  { %v246_v43 = vadd.f32 %v703_v41, %v245_v42 }
 0x126   :  { %v247_v44 = vpop.f32.mrf.mxu0 }
 0x127   :  { %v251_v45 = vmax.f32 %v246_v43, 0.0 }
 0x128   :  { %v248_v46 = vpop.f32.mrf.mxu0 }
 0x129   :  { %v252_v48 = vpack.c.bf16 %v251_v45, %v251_v45 }
 0x12a   :  { %v249_v50 = vpop.f32.mrf.mxu0 }
 0x12b   :  { %784 = vmatmul.mubr.bf16.vlgmr.msra.gmra.mxu1 %v252_v48 }
 0x12c   :  { %475 = vmatpush1.bf16.msra.mxu1 %v819_v47  ;;  %506 = vmatprep.mubr.bf16.mxu1 %v961_v0  ;;  %v861_v0 = vld [vmem:[#allocation6] ss:$8 sps:$4 sm:$0xff]  }
 0x12d   :  { %476 = vmatprep.subr.bf16.mxu1 %v827_v49 }
 0x130   :  { %477 = vmatpush1.bf16.msra.mxu1 %v825_v51 }
 0x131   :  { %478 = vmatprep.subr.bf16.mxu1 %v833_v52 }
 0x134   :  { %479 = vmatpush1.bf16.msra.mxu1 %v831_v53 }
 0x135   :  { %480 = vmatprep.subr.bf16.mxu1 %v839_v54 }
 0x138   :  { %481 = vmatpush1.bf16.msra.mxu1 %v837_v55 }
 0x139   :  { %482 = vmatprep.subr.bf16.mxu1 %v845_v56 }
 0x13c   :  { %483 = vmatpush1.bf16.msra.mxu1 %v843_v57 }
 0x13d   :  { %484 = vmatprep.subr.bf16.mxu1 %v851_v58 }
 0x140   :  { %485 = vmatpush1.bf16.msra.mxu1 %v849_v59 }
 0x141   :  { %486 = vmatprep.subr.bf16.mxu1 %v857_v60 }
 0x144   :  { %487 = vmatpush1.bf16.msra.mxu1 %v855_v61 }
 0x145   :  { %488 = vmatprep.subr.bf16.mxu1 %v863_v62 }
 0x148   :  { %489 = vmatpush1.bf16.msra.mxu1 %v861_v0 }
 0x1eb   :  { %v358_v3 = vpop.f32.mrf.mxu1 }
 0x1ec   :  { %v359_v4 = vadd.f32 %v717_v2, %v358_v3 }
 0x1ed   :  { %v785_v5 = vpop.f32.mrf.mxu1 }
 0x1ee   :  { %v364_v6 = vmax.f32 %v359_v4, 0.0 }
 0x1ef   :  { %v361_v7 = vpop.f32.mrf.mxu1 }
 0x1f0   :  { %v365_v8 = vpack.c.bf16 %v364_v6, %v364_v6 }
 0x1f1   :  { %v786_v9 = vpop.f32.mrf.mxu1 }
 0x1f2   :  { %507 = vmatmul.mubr.bf16.vlgmr.msra.gmra.mxu1 %v365_v8  ;;  %656 = vmatmul.mubr.bf16.vlgmr.msra.gmra.mxu0 %v365_v8 }
 0x2b2   :  { %v508_v23 = vpop.f32.mrf.mxu1  ;;  %v657_v24 = vpop.f32.mrf.mxu0 }
 0x2b3   :  { %v509_v28 = vadd.f32 %v508_v23, %v387_v19  ;;  %v658_v29 = vadd.f32 %v657_v24, %v536_v20 }
 0x2b4   :  { %v510_v25 = vpop.f32.mrf.mxu1  ;;  %v659_v27 = vpop.f32.mrf.mxu0 }
 0x2b5   :  { %v511_v30 = vadd.f32 %v510_v25, %v391_v21  ;;  %v660_v31 = vadd.f32 %v659_v27, %v540_v22 }
 0x2b6   :  { %v512_v32 = vpop.f32.mrf.mxu1  ;;  %v661_v33 = vpop.f32.mrf.mxu0 }
 0x2b7   :  { %v666_v34 = vcombine.low %v509_v28, %v511_v30  ;;  %v681_v35 = vcombine.low %v658_v29, %v660_v31 }
 0x2b8   :  { %v513_v36 = vpop.f32.mrf.mxu1  ;;  %v662_v37 = vpop.f32.mrf.mxu0 }
 0x2b9   :  { %v673_v38 = vrot.slane %v666_v34, %v672_v26  ;;  %v688_v39 = vrot.slane %v681_v35, %v672_v26 }
 0x2bb   :  { %678 = vst.msk [vmem:[%s1085_s9] sm:$0xf] %vm677_vm4, %v673_v38  ;;  %690 = vst.msk [vmem:[%s1086_s10] sm:$0xf] %vm677_vm4, %v688_v39 }
 0x2bc   :  { %699 = vsyncpa [#allocation3], 1 }
 0x2bd   :  { %700 = vsyncpa [#allocation5], 1 }
 0x2be   :  { %701 = vsyncpa [#allocation8], 1 }

</bundles_post_ra>
